<compile_context>
chip_gen: v7x
topology: tpu7x:2x2x1
jax: 0.10.0
libtpu: 0.0.40
codegen_flags: <defaults>
</compile_context>

<pallas_src>
import functools

import jax
import jax.numpy as jnp
import numpy as np
from jax.experimental import pallas as pl
from jax.experimental.pallas import tpu as pltpu


def _round_up(x, m):
    return ((x + m - 1) // m) * m


def _cdiv(a, b):
    return (a + b - 1) // b


# ----------------------------------------------------------------------------
# Pallas kernel: fused gather + margin-distance loss over T sampled triplets.
# Grid = (num_splits [parallel], tiles_per_core [arbitrary]).
# ----------------------------------------------------------------------------
def margin_loss_kernel(idx_ref, beta_ref, batch_ref, out_ref, acc_ref, *,
                       margin, n_valid):
    c = pl.program_id(0)                 # TensorCore split (parallel axis)
    i = pl.program_id(1)                 # tile index within this core (reduction axis)
    tiles_per_core = pl.num_programs(1)

    t_tile = idx_ref.shape[0]
    b_pad = batch_ref.shape[0]

    @pl.when(i == 0)
    def _init():
        acc_ref[...] = jnp.zeros_like(acc_ref)

    # ---- fused row gather: one-hot-difference matmul on the MXU -------------
    idx = idx_ref[...]                                       # (t_tile, 3) int32
    a_idx = idx[:, 0:1]                                      # (t_tile, 1)
    p_idx = idx[:, 1:2]
    n_idx = idx[:, 2:3]
    col = jax.lax.broadcasted_iota(jnp.int32, (t_tile, b_pad), 1)
    oh_a = (col == a_idx).astype(jnp.float32)
    oh_p = (col == p_idx).astype(jnp.float32)
    oh_n = (col == n_idx).astype(jnp.float32)
    # {-1, 0, +1} values are exact in bf16.
    ohd_ap = (oh_a - oh_p).astype(jnp.bfloat16)              # (t_tile, b_pad)
    ohd_an = (oh_a - oh_n).astype(jnp.bfloat16)

    batch = batch_ref[...]                                    # (b_pad, D)
    if batch.dtype == jnp.float32:
        # Split f32 rows into hi + lo bf16 parts: bf16 MXU gather of each part is
        # exact, so the reconstructed difference is accurate to ~2^-18 relative,
        # independent of any f32-matmul precision mode.
        hi = batch.astype(jnp.bfloat16)
        lo = (batch - hi.astype(jnp.float32)).astype(jnp.bfloat16)
        parts = (hi, lo)
    else:
        parts = (batch.astype(jnp.bfloat16),)

    def gathered_diff(ohd):
        acc = None
        for part in parts:
            r = jnp.dot(ohd, part, preferred_element_type=jnp.float32)
            acc = r if acc is None else acc + r
        return acc

    diff_ap = gathered_diff(ohd_ap)                           # (t_tile, D) = anchor - positive
    diff_an = gathered_diff(ohd_an)                           # (t_tile, D) = anchor - negative

    # ---- margin distance loss (1e-8 eps as in the torch reference) ----------
    d_ap = jnp.sqrt(jnp.sum(diff_ap * diff_ap, axis=-1, keepdims=True) + 1e-8)
    d_an = jnp.sqrt(jnp.sum(diff_an * diff_an, axis=-1, keepdims=True) + 1e-8)
    beta = beta_ref[...]                                      # (t_tile, 1) f32

    pos_loss = jnp.maximum(d_ap - beta + margin, 0.0)
    neg_loss = jnp.maximum(beta - d_an + margin, 0.0)
    total = pos_loss + neg_loss
    active = jnp.logical_or(pos_loss > 0.0, neg_loss > 0.0).astype(jnp.float32)

    # Pad-row mask: jnp.where so garbage rows of the last (partial) tile cannot
    # poison the accumulators.
    row = ((c * tiles_per_core + i) * t_tile
           + jax.lax.broadcasted_iota(jnp.int32, (t_tile, 1), 0))
    valid = row < n_valid

    # Single merged accumulator: lane 0 = loss sum, lane 1 = active count,
    # lane 2 = beta sum.
    lane = jax.lax.broadcasted_iota(jnp.int32, (t_tile, 128), 1)
    vals = (jnp.where(lane == 0, total, 0.0)
            + jnp.where(lane == 1, active, 0.0)
            + jnp.where(lane == 2, beta, 0.0))
    vals = jnp.where(valid, vals, 0.0)
    acc_ref[...] += jnp.sum(vals, axis=0, keepdims=True)      # (1, 128)

    @pl.when(i == tiles_per_core - 1)
    def _finalize():
        out_ref[...] = acc_ref[...]


# ----------------------------------------------------------------------------
# Wrapper: tiling / VMEM accounting / partial combine.
# ----------------------------------------------------------------------------
def margin_loss_pallas(batch, trip_idx, beta_t, *, margin, nu,
                       t_tile=None, num_splits=2):
    """batch: (B, D) f32/bf16 embeddings; trip_idx: (T, 3) int32 (anchor, pos, neg
    row indices into batch); beta_t: (T,) or (T, 1) f32 per-triplet beta."""
    B, D = batch.shape
    trip_idx = jnp.asarray(trip_idx, jnp.int32).reshape(-1, 3)
    T = int(trip_idx.shape[0])
    if T == 0:
        return jnp.float32(0.0)
    beta_t = jnp.asarray(beta_t, jnp.float32).reshape(-1, 1)
    num_splits = max(1, int(num_splits))

    # Pad batch rows to a sublane multiple (tiny one-off copy; read once by kernel).
    b_pad = _round_up(max(B, 8), 8)
    if b_pad != B:
        batch = jnp.pad(batch, ((0, b_pad - B), (0, 0)))

    itemsize = jnp.dtype(batch.dtype).itemsize
    d_lanes = _round_up(D, 128)
    b_lanes = _round_up(b_pad, 128)

    # --- hardware-padded VMEM accounting -------------------------------------
    try:
        vmem_cap = int(getattr(pltpu.get_tpu_info(), "vmem_capacity_bytes", 64 << 20))
    except Exception:  # pragma: no cover
        vmem_cap = 64 << 20

    # Resident batch (assume double-buffered) + in-kernel hi/lo bf16 copies (f32 only).
    batch_bytes = 2 * b_pad * d_lanes * itemsize
    if batch.dtype == jnp.float32:
        batch_bytes += 2 * b_pad * d_lanes * 2
    # Per tile row (lane-padded): idx (t,3)->(t,128) i32 + beta (t,1)->(t,128) f32,
    # each double-buffered, + live f32 intermediates (2 one-hot diffs, 2 gathered
    # diffs, misc (t,128) vectors).
    per_row = 2 * (128 * 4 + 128 * 4) + 4 * (2 * b_lanes + 2 * d_lanes + 2 * 128)

    if t_tile is None:
        # Generation-aware budget: ~8 MiB on v7x (64 MiB VMEM), ~14 MiB otherwise.
        budget = (8 << 20) if vmem_cap <= (64 << 20) else (14 << 20)
        t_tile = (budget - batch_bytes) // per_row
        t_tile = max(256, min(int(t_tile), 4096))
    # Never larger than one core's share of the work; keep a multiple of 8.
    t_cap = _round_up(max(_cdiv(T, num_splits), 1), 8)
    t_tile = max(8, min((int(t_tile) // 8) * 8, t_cap, 8192))

    tiles_total = _cdiv(T, t_tile)
    tiles_per_core = _cdiv(tiles_total, num_splits)
    T_pad = num_splits * tiles_per_core * t_tile

    # Only the tiny index/beta streams are padded (no (T, D) slabs exist anymore).
    if T_pad != T:
        trip_idx = jnp.pad(trip_idx, ((0, T_pad - T), (0, 0)))
        beta_t = jnp.pad(beta_t, ((0, T_pad - T), (0, 0)))

    needed = batch_bytes + t_tile * per_row + (2 << 20)
    vmem_limit = int(min(max(needed, 16 << 20), int(0.75 * vmem_cap)))

    kernel = functools.partial(margin_loss_kernel,
                               margin=float(margin), n_valid=int(T))

    def tile_map(c, i):
        return (c * tiles_per_core + i, 0)

    out = pl.pallas_call(
        kernel,
        out_shape=jax.ShapeDtypeStruct((1, num_splits * 128), jnp.float32),
        grid=(num_splits, tiles_per_core),
        in_specs=[
            pl.BlockSpec((t_tile, 3), tile_map),               # triplet indices
            pl.BlockSpec((t_tile, 1), tile_map),               # per-triplet beta
            pl.BlockSpec((b_pad, D), lambda c, i: (0, 0)),     # embeddings, VMEM-resident
        ],
        out_specs=pl.BlockSpec((1, 128), lambda c, i: (0, c)),  # per-core partials
        scratch_shapes=[pltpu.VMEM((1, 128), jnp.float32)],
        compiler_params=pltpu.CompilerParams(
            dimension_semantics=("parallel", "arbitrary"),
            vmem_limit_bytes=vmem_limit,
        ),
    )(trip_idx, beta_t, batch)

    parts = out.reshape(num_splits, 128)[:, :3].sum(axis=0)
    total_sum, pair_count, beta_sum = parts[0], parts[1], parts[2]
    # torch: if pair_count == 0: loss = sum(total) else sum(total) / pair_count
    loss = jnp.where(pair_count == 0.0, total_sum,
                     total_sum / jnp.maximum(pair_count, 1.0))
    return loss + jnp.float32(nu) * beta_sum


# ----------------------------------------------------------------------------
# Glue: simple deterministic triplet sampler (stand-in for opt's batchminer)
# ----------------------------------------------------------------------------
def simple_sampler(labels_np):
    """For each anchor i: first other idx with the same label as positive,
    first idx with a different label as negative."""
    triplets = []
    B = labels_np.shape[0]
    for i in range(B):
        pos = [j for j in range(B) if j != i and labels_np[j] == labels_np[i]]
        neg = [j for j in range(B) if labels_np[j] != labels_np[i]]
        if pos and neg:
            triplets.append((i, pos[0], neg[0]))
    return triplets


# ----------------------------------------------------------------------------
# Criterion-equivalent wrapper (forward pass of loss/margin.py::Criterion)
# ----------------------------------------------------------------------------
class MarginCriterion:
    def __init__(self, n_classes, margin=0.2, nu=0.0, beta_val=1.2, beta_constant=False):
        self.n_classes = n_classes
        self.margin = margin
        self.nu = nu
        self.beta_constant = beta_constant
        self.beta_val = beta_val
        # nn.Parameter(torch.ones(n_classes) * beta) -> deterministic init
        self.beta = jnp.ones((n_classes,), dtype=jnp.float32) * beta_val

    def __call__(self, batch, labels, t_tile=None):
        labels_np = np.asarray(labels)
        sampled_triplets = simple_sampler(labels_np)
        if len(sampled_triplets) == 0:
            return jnp.float32(0.0)
        trip = np.asarray(sampled_triplets, dtype=np.int32)         # (T, 3)
        if self.beta_constant:
            beta_t = jnp.full((trip.shape[0],), self.beta_val, dtype=jnp.float32)
        else:
            beta_t = jnp.take(self.beta, jnp.asarray(labels_np[trip[:, 0]]))
        return margin_loss_pallas(batch, trip, beta_t,
                                  margin=self.margin, nu=self.nu, t_tile=t_tile)


# ----------------------------------------------------------------------------
# Pure-JAX reference (for correctness checks)
# ----------------------------------------------------------------------------
def margin_loss_ref(batch, trip_idx, beta_t, margin, nu):
    trip_idx = jnp.asarray(trip_idx, jnp.int32)
    a = jnp.take(batch, trip_idx[:, 0], axis=0).astype(jnp.float32)
    p = jnp.take(batch, trip_idx[:, 1], axis=0).astype(jnp.float32)
    n = jnp.take(batch, trip_idx[:, 2], axis=0).astype(jnp.float32)
    beta = jnp.asarray(beta_t, jnp.float32).reshape(-1)
    d_ap = jnp.sqrt(jnp.sum((a - p) ** 2, axis=-1) + 1e-8)
    d_an = jnp.sqrt(jnp.sum((a - n) ** 2, axis=-1) + 1e-8)
    pos_loss = jax.nn.relu(d_ap - beta + margin)
    neg_loss = jax.nn.relu(beta - d_an + margin)
    pair_count = jnp.sum(jnp.logical_or(pos_loss > 0, neg_loss > 0).astype(jnp.float32))
    total = jnp.sum(pos_loss + neg_loss)
    loss = jnp.where(pair_count == 0.0, total, total / jnp.maximum(pair_count, 1.0))
    return loss + nu * jnp.sum(beta)


if __name__ == "__main__":
    key = jax.random.PRNGKey(0)
    B, D, n_classes = 8, 32, 4
    batch = jax.random.normal(key, (B, D), dtype=jnp.float32)
    batch = batch / jnp.linalg.norm(batch, axis=-1, keepdims=True)
    labels = np.array([0, 0, 1, 1, 2, 2, 3, 3], dtype=np.int32)

    # --- Test 1: full Criterion forward (trainable beta), default tiling -----
    crit = MarginCriterion(n_classes, margin=0.2, nu=0.0,
                           beta_val=1.2, beta_constant=False)
    loss = jax.block_until_ready(crit(batch, labels))
    trip = np.asarray(simple_sampler(labels), dtype=np.int32)
    beta_t = jnp.take(crit.beta, jnp.asarray(labels[trip[:, 0]]))
    ref = margin_loss_ref(batch, trip, beta_t, 0.2, 0.0)
    np.testing.assert_allclose(np.asarray(loss), np.asarray(ref), rtol=1e-4, atol=1e-4)

    # --- Test 2: multi-tile path, masked pad rows on both cores, nu != 0 -----
    trip_big = np.tile(trip, (5, 1))                               # T = 40
    beta_big = jnp.tile(beta_t, (5,))
    loss_big = jax.block_until_ready(
        margin_loss_pallas(batch, trip_big, beta_big, margin=0.2, nu=0.01, t_tile=16))
    ref_big = margin_loss_ref(batch, trip_big, beta_big, 0.2, 0.01)
    np.testing.assert_allclose(np.asarray(loss_big), np.asarray(ref_big),
                               rtol=1e-4, atol=1e-4)

    # --- Test 3: bf16 embeddings (bf16 gather-by-matmul is exact) ------------
    batch16 = batch.astype(jnp.bfloat16)
    loss_bf16 = jax.block_until_ready(
        margin_loss_pallas(batch16, trip_big, beta_big, margin=0.2, nu=0.0, t_tile=16))
    ref_bf16 = margin_loss_ref(batch16, trip_big, beta_big, 0.2, 0.0)
    np.testing.assert_allclose(np.asarray(loss_bf16), np.asarray(ref_bf16),
                               rtol=1e-5, atol=1e-5)

    # --- Test 4: larger synthetic triplet set, heuristic tile size -----------
    k1, k2, k3 = jax.random.split(jax.random.PRNGKey(1), 3)
    B2, D2, T2 = 64, 128, 500
    batch2 = jax.random.normal(k1, (B2, D2), dtype=jnp.float32)
    batch2 = batch2 / jnp.linalg.norm(batch2, axis=-1, keepdims=True)
    trip2 = np.asarray(jax.random.randint(k2, (T2, 3), 0, B2), dtype=np.int32)
    beta2 = 0.6 + 0.2 * jax.random.uniform(k3, (T2,), dtype=jnp.float32)
    loss2 = jax.block_until_ready(
        margin_loss_pallas(batch2, trip2, beta2, margin=0.05, nu=0.0))
    ref2 = margin_loss_ref(batch2, trip2, beta2, 0.05, 0.0)
    np.testing.assert_allclose(np.asarray(loss2), np.asarray(ref2), rtol=1e-4, atol=1e-4)

    print("KERNEL_OK")
</pallas_src>

<mosaic_0001>
module attributes {stable_mosaic.version = 11 : i64} {
  func.func @margin_loss_kernel(%arg0: i32, %arg1: i32, %arg2: memref<8x3xi32, #tpu.memory_space<vmem>>, %arg3: memref<8x1xf32, #tpu.memory_space<vmem>>, %arg4: memref<8x32xf32, #tpu.memory_space<vmem>>, %arg5: memref<1x128xf32, #tpu.memory_space<vmem>>, %arg6: memref<1x128xf32, #tpu.memory_space<vmem>>) attributes {dimension_semantics = [#tpu.dimension_semantics<parallel>, #tpu.dimension_semantics<arbitrary>], iteration_bounds = array<i64: 2, 1>, scalar_prefetch = 0 : i64, scratch_operands = 1 : i64, tpu.core_type = #tpu.core_type<tc>, window_params = [{transform_indices = @transform_0, window_bounds = array<i64: 8, 3>}, {transform_indices = @transform_1, window_bounds = array<i64: 8, 1>}, {pipeline_mode = #tpu.pipeline_mode<synchronous>, transform_indices = @transform_2, window_bounds = array<i64: 8, 32>}, {transform_indices = @transform_3, window_bounds = array<i64: 1, 128>}]} {
    %c0_i32 = arith.constant 0 : i32
    %0 = arith.cmpi eq, %arg1, %c0_i32 : i32
    %1 = arith.extui %0 : i1 to i32
    %c0_i32_0 = arith.constant 0 : i32
    %2 = arith.cmpi ne, %1, %c0_i32_0 : i32
    scf.if %2 {
      %cst_33 = arith.constant 0.000000e+00 : f32
      %107 = vector.broadcast %cst_33 : f32 to vector<1x128xf32>
      %c0_34 = arith.constant 0 : index
      %c0_35 = arith.constant 0 : index
      %108 = vector.load %arg6[%c0_34, %c0_35] : memref<1x128xf32, #tpu.memory_space<vmem>>, vector<1x128xf32>
      tpu.vector_store %arg6[%c0_34, %c0_35], %107 {strides = array<i32>} : memref<1x128xf32, #tpu.memory_space<vmem>>, vector<1x128xf32>,
    } else {
    }
    %c0 = arith.constant 0 : index
    %c0_1 = arith.constant 0 : index
    %3 = vector.load %arg2[%c0, %c0_1] : memref<8x3xi32, #tpu.memory_space<vmem>>, vector<8x3xi32>
    %4 = vector.extract_strided_slice %3 {offsets = [0, 0], sizes = [8, 1], strides = [1, 1]} : vector<8x3xi32> to vector<8x1xi32>
    %5 = vector.extract_strided_slice %3 {offsets = [0, 1], sizes = [8, 1], strides = [1, 1]} : vector<8x3xi32> to vector<8x1xi32>
    %6 = vector.extract_strided_slice %3 {offsets = [0, 2], sizes = [8, 1], strides = [1, 1]} : vector<8x3xi32> to vector<8x1xi32>
    %7 = tpu.iota {dimensions = array<i32: 1>} : vector<8x8xi32>
    %8 = vector.broadcast %4 : vector<8x1xi32> to vector<8x8xi32>
    %9 = arith.cmpi eq, %7, %8 : vector<8x8xi32>
    %10 = arith.extui %9 : vector<8x8xi1> to vector<8x8xi32>
    %11 = arith.sitofp %10 : vector<8x8xi32> to vector<8x8xf32>
    %12 = vector.broadcast %5 : vector<8x1xi32> to vector<8x8xi32>
    %13 = arith.cmpi eq, %7, %12 : vector<8x8xi32>
    %14 = arith.extui %13 : vector<8x8xi1> to vector<8x8xi32>
    %15 = arith.sitofp %14 : vector<8x8xi32> to vector<8x8xf32>
    %16 = vector.broadcast %6 : vector<8x1xi32> to vector<8x8xi32>
    %17 = arith.cmpi eq, %7, %16 : vector<8x8xi32>
    %18 = arith.extui %17 : vector<8x8xi1> to vector<8x8xi32>
    %19 = arith.sitofp %18 : vector<8x8xi32> to vector<8x8xf32>
    %20 = arith.subf %11, %15 : vector<8x8xf32>
    %21 = arith.truncf %20 : vector<8x8xf32> to vector<8x8xbf16>
    %22 = arith.subf %11, %19 : vector<8x8xf32>
    %23 = arith.truncf %22 : vector<8x8xf32> to vector<8x8xbf16>
    %c0_2 = arith.constant 0 : index
    %c0_3 = arith.constant 0 : index
    %24 = vector.load %arg4[%c0_2, %c0_3] : memref<8x32xf32, #tpu.memory_space<vmem>>, vector<8x32xf32>
    %25 = arith.truncf %24 : vector<8x32xf32> to vector<8x32xbf16>
    %26 = arith.extf %25 : vector<8x32xbf16> to vector<8x32xf32>
    %27 = arith.subf %24, %26 : vector<8x32xf32>
    %28 = arith.truncf %27 : vector<8x32xf32> to vector<8x32xbf16>
    %cst = arith.constant dense<0.000000e+00> : vector<8x32xf32>
    %29 = tpu.matmul %21, %25, %cst {dimension_numbers = #tpu.dot_dimension_numbers<[1], [0], [0], [1], [0, 0, 1, 1], [], []>} : vector<8x8xbf16>, vector<8x32xbf16>, vector<8x32xf32> -> vector<8x32xf32>
    %cst_4 = arith.constant dense<0.000000e+00> : vector<8x32xf32>
    %30 = tpu.matmul %21, %28, %cst_4 {dimension_numbers = #tpu.dot_dimension_numbers<[1], [0], [0], [1], [0, 0, 1, 1], [], []>} : vector<8x8xbf16>, vector<8x32xbf16>, vector<8x32xf32> -> vector<8x32xf32>
    %31 = arith.addf %29, %30 : vector<8x32xf32>
    %cst_5 = arith.constant dense<0.000000e+00> : vector<8x32xf32>
    %32 = tpu.matmul %23, %25, %cst_5 {dimension_numbers = #tpu.dot_dimension_numbers<[1], [0], [0], [1], [0, 0, 1, 1], [], []>} : vector<8x8xbf16>, vector<8x32xbf16>, vector<8x32xf32> -> vector<8x32xf32>
    %cst_6 = arith.constant dense<0.000000e+00> : vector<8x32xf32>
    %33 = tpu.matmul %23, %28, %cst_6 {dimension_numbers = #tpu.dot_dimension_numbers<[1], [0], [0], [1], [0, 0, 1, 1], [], []>} : vector<8x8xbf16>, vector<8x32xbf16>, vector<8x32xf32> -> vector<8x32xf32>
    %34 = arith.addf %32, %33 : vector<8x32xf32>
    %35 = arith.mulf %31, %31 : vector<8x32xf32>
    %cst_7 = arith.constant dense<0.000000e+00> : vector<8xf32>
    %36 = vector.multi_reduction <add>, %35, %cst_7 [1] : vector<8x32xf32> to vector<8xf32>
    %37 = vector.shape_cast %36 : vector<8xf32> to vector<8x1xf32>
    %cst_8 = arith.constant 9.99999993E-9 : f32
    %38 = vector.broadcast %cst_8 : f32 to vector<8x1xf32>
    %39 = arith.addf %37, %38 : vector<8x1xf32>
    %40 = math.sqrt %39 : vector<8x1xf32>
    %41 = arith.mulf %34, %34 : vector<8x32xf32>
    %cst_9 = arith.constant dense<0.000000e+00> : vector<8xf32>
    %42 = vector.multi_reduction <add>, %41, %cst_9 [1] : vector<8x32xf32> to vector<8xf32>
    %43 = vector.shape_cast %42 : vector<8xf32> to vector<8x1xf32>
    %cst_10 = arith.constant 9.99999993E-9 : f32
    %44 = vector.broadcast %cst_10 : f32 to vector<8x1xf32>
    %45 = arith.addf %43, %44 : vector<8x1xf32>
    %46 = math.sqrt %45 : vector<8x1xf32>
    %c0_11 = arith.constant 0 : index
    %c0_12 = arith.constant 0 : index
    %47 = vector.load %arg3[%c0_11, %c0_12] : memref<8x1xf32, #tpu.memory_space<vmem>>, vector<8x1xf32>
    %48 = arith.subf %40, %47 : vector<8x1xf32>
    %cst_13 = arith.constant 2.000000e-01 : f32
    %49 = vector.broadcast %cst_13 : f32 to vector<8x1xf32>
    %50 = arith.addf %48, %49 : vector<8x1xf32>
    %cst_14 = arith.constant 0.000000e+00 : f32
    %51 = vector.broadcast %cst_14 : f32 to vector<8x1xf32>
    %52 = arith.maximumf %50, %51 : vector<8x1xf32>
    %53 = arith.subf %47, %46 : vector<8x1xf32>
    %cst_15 = arith.constant 2.000000e-01 : f32
    %54 = vector.broadcast %cst_15 : f32 to vector<8x1xf32>
    %55 = arith.addf %53, %54 : vector<8x1xf32>
    %cst_16 = arith.constant 0.000000e+00 : f32
    %56 = vector.broadcast %cst_16 : f32 to vector<8x1xf32>
    %57 = arith.maximumf %55, %56 : vector<8x1xf32>
    %58 = arith.addf %52, %57 : vector<8x1xf32>
    %cst_17 = arith.constant 0.000000e+00 : f32
    %59 = vector.broadcast %cst_17 : f32 to vector<8x1xf32>
    %60 = arith.cmpf ogt, %52, %59 : vector<8x1xf32>
    %cst_18 = arith.constant 0.000000e+00 : f32
    %61 = vector.broadcast %cst_18 : f32 to vector<8x1xf32>
    %62 = arith.cmpf ogt, %57, %61 : vector<8x1xf32>
    %63 = arith.ori %60, %62 : vector<8x1xi1>
    %64 = arith.extui %63 : vector<8x1xi1> to vector<8x1xi32>
    %65 = arith.sitofp %64 : vector<8x1xi32> to vector<8x1xf32>
    %c1_i32 = arith.constant 1 : i32
    %66 = arith.muli %arg0, %c1_i32 : i32
    %67 = arith.addi %66, %arg1 : i32
    %c8_i32 = arith.constant 8 : i32
    %68 = arith.muli %67, %c8_i32 : i32
    %69 = tpu.iota {dimensions = array<i32: 0>} : vector<8x1xi32>
    %70 = vector.broadcast %68 : i32 to vector<8x1xi32>
    %71 = arith.addi %70, %69 : vector<8x1xi32>
    %c8_i32_19 = arith.constant 8 : i32
    %72 = vector.broadcast %c8_i32_19 : i32 to vector<8x1xi32>
    %73 = arith.cmpi slt, %71, %72 : vector<8x1xi32>
    %74 = tpu.iota {dimensions = array<i32: 1>} : vector<8x128xi32>
    %c0_i32_20 = arith.constant 0 : i32
    %75 = vector.broadcast %c0_i32_20 : i32 to vector<8x128xi32>
    %76 = arith.cmpi eq, %74, %75 : vector<8x128xi32>
    %cst_21 = arith.constant 0.000000e+00 : f32
    %77 = vector.shape_cast %58 : vector<8x1xf32> to vector<8x1xf32>
    %78 = vector.broadcast %77 : vector<8x1xf32> to vector<8x128xf32>
    %79 = vector.broadcast %cst_21 : f32 to vector<8x128xf32>
    %80 = arith.select %76, %78, %79 : vector<8x128xi1>, vector<8x128xf32>
    %c1_i32_22 = arith.constant 1 : i32
    %81 = vector.broadcast %c1_i32_22 : i32 to vector<8x128xi32>
    %82 = arith.cmpi eq, %74, %81 : vector<8x128xi32>
    %cst_23 = arith.constant 0.000000e+00 : f32
    %83 = vector.shape_cast %65 : vector<8x1xf32> to vector<8x1xf32>
    %84 = vector.broadcast %83 : vector<8x1xf32> to vector<8x128xf32>
    %85 = vector.broadcast %cst_23 : f32 to vector<8x128xf32>
    %86 = arith.select %82, %84, %85 : vector<8x128xi1>, vector<8x128xf32>
    %87 = arith.addf %80, %86 : vector<8x128xf32>
    %c2_i32 = arith.constant 2 : i32
    %88 = vector.broadcast %c2_i32 : i32 to vector<8x128xi32>
    %89 = arith.cmpi eq, %74, %88 : vector<8x128xi32>
    %cst_24 = arith.constant 0.000000e+00 : f32
    %90 = vector.shape_cast %47 : vector<8x1xf32> to vector<8x1xf32>
    %91 = vector.broadcast %90 : vector<8x1xf32> to vector<8x128xf32>
    %92 = vector.broadcast %cst_24 : f32 to vector<8x128xf32>
    %93 = arith.select %89, %91, %92 : vector<8x128xi1>, vector<8x128xf32>
    %94 = arith.addf %87, %93 : vector<8x128xf32>
    %cst_25 = arith.constant 0.000000e+00 : f32
    %95 = vector.shape_cast %73 : vector<8x1xi1> to vector<8x1xi1>
    %96 = vector.broadcast %95 : vector<8x1xi1> to vector<8x128xi1>
    %97 = vector.broadcast %cst_25 : f32 to vector<8x128xf32>
    %98 = arith.select %96, %94, %97 : vector<8x128xi1>, vector<8x128xf32>
    %c0_26 = arith.constant 0 : index
    %c0_27 = arith.constant 0 : index
    %99 = vector.load %arg6[%c0_26, %c0_27] : memref<1x128xf32, #tpu.memory_space<vmem>>, vector<1x128xf32>
    %cst_28 = arith.constant dense<0.000000e+00> : vector<128xf32>
    %100 = vector.multi_reduction <add>, %98, %cst_28 [0] : vector<8x128xf32> to vector<128xf32>
    %101 = vector.shape_cast %100 : vector<128xf32> to vector<1x128xf32>
    %102 = arith.addf %99, %101 : vector<1x128xf32>
    %c0_29 = arith.constant 0 : index
    %c0_30 = arith.constant 0 : index
    %103 = vector.load %arg6[%c0_29, %c0_30] : memref<1x128xf32, #tpu.memory_space<vmem>>, vector<1x128xf32>
    tpu.vector_store %arg6[%c0_29, %c0_30], %102 {strides = array<i32>} : memref<1x128xf32, #tpu.memory_space<vmem>>, vector<1x128xf32>,
    %c0_i32_31 = arith.constant 0 : i32
    %104 = arith.cmpi eq, %arg1, %c0_i32_31 : i32
    %105 = arith.extui %104 : i1 to i32
    %c0_i32_32 = arith.constant 0 : i32
    %106 = arith.cmpi ne, %105, %c0_i32_32 : i32
    scf.if %106 {
      %c0_33 = arith.constant 0 : index
      %c0_34 = arith.constant 0 : index
      %107 = vector.load %arg6[%c0_33, %c0_34] : memref<1x128xf32, #tpu.memory_space<vmem>>, vector<1x128xf32>
      %c0_35 = arith.constant 0 : index
      %c0_36 = arith.constant 0 : index
      %108 = vector.load %arg5[%c0_35, %c0_36] : memref<1x128xf32, #tpu.memory_space<vmem>>, vector<1x128xf32>
      tpu.vector_store %arg5[%c0_35, %c0_36], %107 {strides = array<i32>} : memref<1x128xf32, #tpu.memory_space<vmem>>, vector<1x128xf32>,
    } else {
    }
    return
  }
  func.func @transform_0(%arg0: i32, %arg1: i32) -> (i32, i32) {
    %c1_i32 = arith.constant 1 : i32
    %0 = arith.muli %arg0, %c1_i32 : i32
    %1 = arith.addi %0, %arg1 : i32
    %c0_i32 = arith.constant 0 : i32
    %c0_i32_0 = arith.constant 0 : i32
    return %1, %c0_i32 : i32, i32
  }
  func.func @transform_1(%arg0: i32, %arg1: i32) -> (i32, i32) {
    %c1_i32 = arith.constant 1 : i32
    %0 = arith.muli %arg0, %c1_i32 : i32
    %1 = arith.addi %0, %arg1 : i32
    %c0_i32 = arith.constant 0 : i32
    %c0_i32_0 = arith.constant 0 : i32
    return %1, %c0_i32 : i32, i32
  }
  func.func @transform_2(%arg0: i32, %arg1: i32) -> (i32, i32) {
    %c0_i32 = arith.constant 0 : i32
    %c0_i32_0 = arith.constant 0 : i32
    %c0_i32_1 = arith.constant 0 : i32
    return %c0_i32, %c0_i32_0 : i32, i32
  }
  func.func @transform_3(%arg0: i32, %arg1: i32) -> (i32, i32) {
    %c0_i32 = arith.constant 0 : i32
    %c0_i32_0 = arith.constant 0 : i32
    return %c0_i32, %arg0 : i32, i32
  }
}

</mosaic_0001>

<bundles_post_ra>
// kernel: tpu_custom_call.1
= control target key start
LH: loop header
LB: loop body
LE: loop exit
PB: predicated region body
PF: predicated region fallthrough
CT: control target
= control target key end

     0   :  { %8 = vsyncpa [#allocation4], 0  ;;  %s978_s0 = inlined_call_operand.vmem [shape: s32[16,3], index: 0, kind: input, shape index: {}]   ;;  %s979_s1 = inlined_call_operand.vmem [shape: f32[16,1], index: 1, kind: input, shape index: {}]   ;;  %s980_s2 = inlined_call_operand.vmem [shape: f32[8,32], index: 2, kind: input, shape index: {}]   ;;  %s981_s3 = inlined_call_operand.hbm [shape: f32[1,256], index: 3, kind: output, shape index: {}]  }
   0x1   :  { %10 = vsyncpa [#allocation4 + $0x1], 0  ;;  %s825_s12 = smov 0   ;;  %s827_s13 = smov 0  }
   0x2   :  { %s829_s14 = smov 0   ;;  %s831_s15 = smov 0  }
   0x3   :  { %s833_s16 = smov 0   ;;  %s835_s17 = smov 0  }
   0x4 LB: > { %s591_s18 = sadd.s32 4294967295, %s797_s17   ;;  %s592_s19 = sadd.s32 4294967294, %s797_s17   ;;  %s797_s17 = sphi %s835_s17, %s16_s17   ;;  %s793_s16 = sphi %s833_s16, %s988_s16   ;;  %s789_s15 = sphi %s831_s15, %s987_s15   ;;  %s785_s14 = sphi %s829_s14, %s986_s14   ;;  %s781_s13 = sphi %s827_s13, %s985_s13   ;;  %s777_s12 = sphi %s825_s12, %s984_s12  }
   0x5   : > { %s28_s20 = sadd.s32 1, %s793_s16  ;;  %s112_s21 = sadd.s32 1, %s785_s14 }
   0x6   : > { %p30_p0 = scmp.ge.s32.totalorder %s28_s20, 2  ;;  %p122_p1 = scmp.ne.s32.totalorder %s785_s14, %s781_s13 }
   0x7   : > { %p123_p2 = scmp.eq.s32.totalorder %s591_s18, 1  ;;  %p128_p3 = scmp.ne.s32.totalorder %s781_s13, %s777_s12 }
   0x8   : > { %s990_s20 = smov (%p30_p0, %s28_s20), 0  ;;  %p129_p5 = scmp.eq.s32.totalorder %s592_s19, 1 }
   0x9   : > { %p865_p4 = por %p123_p2, %p122_p1  ;;  %s109_s23 = ssub.s32 %s793_s16, %s990_s20 }
   0xa   : > { %p595_p6 = scmp.ge.s32.totalorder %s797_s17, 1  ;;  %p110_p7 = scmp.eq.s32.totalorder %s109_s23, 0 }
   0xb   : > { %p872_p8 = por %p129_p5, %p128_p3  ;;  %p168_p9 = scmp.lt.s32.totalorder %s797_s17, 3 }
   0xc   : > { %s878_s25 = scalar_select %p110_p7, %s785_s14, %s112_s21  }
   0xd   : > { %p169_p10 = pnand %p595_p6, %p168_p9 }
   0xe   : > { %p197_p11 = scmp.lt.s32.totalorder (!%p169_p10), %s789_s15, 1  ;;  %v239_v0 = vld [vmem:[%s980_s2] sm:$0xff] (!%p169_p10)  ;;  %v799_v1 = vmov (!%p169_p10), 2   ;;  %v800_v2 = vmov (!%p169_p10), 0   ;;  %v801_v3 = vmov (!%p169_p10), 0.0   ;;  %vm248_vm0 = vcmask (!%p169_p10), 1043456  }
   0xf   : > { %172 = sbr.rel (%p169_p10) target bundleno = 732 (0x2dc), region = 32  ;;  %712 = vset.pattern.permute.xlu1 (!%p169_p10), %v799_v1  ;;  %710 = vset.pattern.permute.xlu0 (!%p169_p10), %v800_v2  ;;  %213 = vst [vmem:[#allocation2] sm:$0x1] (!%p169_p10), %v801_v3  ;;  %v240_v4 = vpack.c.bf16 (!%p169_p10), %v239_v0, %v239_v0  ;;  %v802_v10 = vmov (!%p169_p10), 1   ;;  %vm803_vm1 = vmmov (!%p169_p10), 0   ;;  %v215_v12 = vlaneseq (!%p169_p10)  ;;  %s606_s9 = sshll.u32 (!%p169_p10), %s789_s15, 3 }
  0x10   : > { %630 = vmatprep.subr.bf16.mxu1 (!%p169_p10), %v801_v3  ;;  %618 = vmatprep.subr.bf16.mxu0 (!%p169_p10), %v801_v3  ;;  %vm244_vm4 = vcmask (!%p169_p10), 64512   ;;  %vm419_vm6 = vcmask (!%p169_p10), 261120   ;;  %v460_v60 = vstv (!%p169_p10), %s606_s9  ;;  %s194_s10 = sand.u32 (!%p169_p10), 1, %s781_s13   ;;  %s607_s11 = sshll.u32 (!%p169_p10), %s789_s15, 4 }
  0x11   : > { %v241_v5 = vunpack.c.l.bf16 (!%p169_p10), %v240_v4  ;;  %v293_v11 = vsel (!%p169_p10), %vm248_vm0, %v240_v4, 0  ;;  %632 = vmatprep.mubr.msk.bf16.mxu1 (!%p169_p10), %vm803_vm1, %v801_v3  ;;  %620 = vmatprep.mubr.msk.bf16.mxu0 (!%p169_p10), %vm803_vm1, %v801_v3  ;;  %v903_v13 = vand.u32 (!%p169_p10), 127, %v215_v12  ;;  %v459_v59 = vshrl.u32 (!%p169_p10), %v215_v12, 7  ;;  %s195_s18 = scalar_lea.vmem (!%p169_p10), [#allocation3], %s194_s10  ;;  %s931_s26 = scalar_lea.hbm (!%p169_p10), %s981_s3, %s607_s11 }
  0x12   : > { %s516_s19 = sshll.u32 (!%p169_p10), %s195_s18, 4  ;;  %s504_s27 = scalar_lea.sflag (!%p169_p10), [#allocation4], %s194_s10  ;;  %s933_s19 = int_to_ptr.vmem [resolvable:$true] %s516_s19 }
  0x13   : > { %v242_v6 = vsub.f32 (!%p169_p10), %v239_v0, %v241_v5  ;;  %vm463_vm14 = vcmp.eq.s32.totalorder (!%p169_p10), %v903_v13, 0  ;;  %vm470_vm15 = vcmp.eq.s32.totalorder (!%p169_p10), %v903_v13, 1  ;;  %v461_v0 = vadd.s32 (!%p169_p10), %v460_v60, %v459_v59 }
  0x15   : > { %v243_v8 = vpack.c.bf16 (!%p169_p10), %v242_v6, %v242_v6 }
  0x16   : > { %s886_s28 = scalar_select %p197_p11, %s789_s15, 1  ;;  %v489_v12 = vld [vmem:[#allocation2] sm:$0x1] }
  0x17   : > { %v250_v9 = vsel %vm248_vm0, %v243_v8, 0  ;;  %vm478_vm0 = vcmp.eq.s32.totalorder %v903_v13, 2  ;;  %s804_s15 = smov [#allocation3]  }
  0x18   : > { %s596_s29 = sshll.u32 %s886_s28, 3  ;;  %631 = vmatpush3.bf16.msra.mxu1 %v250_v9  ;;  %619 = vmatpush3.bf16.msra.mxu0 %v250_v9  ;;  %s719_s28 = scalar_lea.vmem %s933_s19, 16 }
  0x19   : > { %s200_s5 = scalar_lea.vmem %s978_s0, %s596_s29  ;;  %624 = vmatprep.subr.bf16.mxu0 %v801_v3  ;;  %636 = vmatprep.subr.bf16.mxu1 %v801_v3  ;;  %s206_s8 = scalar_lea.vmem %s979_s1, %s596_s29 }
  0x1a   : > { %v214_v7 = vld [vmem:[%s200_s5] sm:$0xff]  ;;  %p720_p12 = scmp.ne.s32.totalorder %s933_s19, %s719_s28  ;;  %s723_s29 = sshll.u32 %s804_s15, 4  ;;  %s724_s29 = int_to_ptr.vmem [resolvable:$false] %s723_s29 }
  0x1b   : > { %230 = vperm.xlu1 %712, %v214_v7   ;;  %218 = vperm.xlu0 %710, %v214_v7   ;;  %v443_v42 = vld [vmem:[%s206_s8] sm:$0xff]  ;;  %s725_s30 = scalar_lea.vmem %s724_s29, 32  ;;  %p726_p1 = scmp.lt.s32.totalorder %s933_s19, %s724_s29 }
  0x1c   : > { %p721_p13 = pnand %p720_p12, %p865_p4  ;;  %p727_p2 = scmp.lt.s32.totalorder %s725_s30, %s719_s28 }
  0x1e   : > { %p722_p0 = pneg %p721_p13  ;;  %p728_p3 = por %p727_p2, %p726_p1 }
  0x1f   : > { %711 = vset.pattern.permute.xlu0 %v802_v10  ;;  %713 = vset.pattern.permute.xlu1 %v800_v2 }
  0x20   : > { %224 = vperm.xlu0 %711, %v214_v7   ;;  %p729_p5 = pnand %p728_p3, %p722_p0 }
  0x24   : > { %714 = vset.pattern.permute.xlu0 %v800_v2 }
  0x9a   : > { %v231_v14 = vpop.permute.xlu1 %230  ;;  %v219_v15 = vpop.permute.xlu0 %218 }
  0x9b   : > { %vm232_vm2 = vcmp.eq.s32.totalorder %v903_v13, %v231_v14  ;;  %vm220_vm3 = vcmp.eq.s32.totalorder %v903_v13, %v219_v15 }
  0x9c   : > { %v600_v16 = vsel %vm232_vm2, 1.0, %v801_v3  ;;  %v598_v17 = vsel %vm220_vm3, 1.0, %v801_v3 }
  0x9d   : > { %v237_v18 = vsub.f32 %v598_v17, %v600_v16 }
  0x9f   : > { %v238_v19 = vpack.c.bf16 %v237_v18, %v237_v18  ;;  %v225_v20 = vpop.permute.xlu0 %224 }
  0xa0   : > { %vm226_vm5 = vcmp.eq.s32.totalorder %v903_v13, %v225_v20 }
  0xa1   : > { %v599_v21 = vsel %vm226_vm5, 1.0, %v801_v3  ;;  %633 = vmatmul.mubr.msk.bf16.vlgmr.msra.gmra.mrb[0].mxu1 %vm244_vm4, %v238_v19 }
  0xa2   : > { %v235_v22 = vsub.f32 %v598_v17, %v599_v21  ;;  %637 = vmatpush3.bf16.msra.mxu1 %v293_v11  ;;  %638 = vmatprep.mubr.msk.bf16.mxu1 %vm803_vm1, %v801_v3 }
  0xa4   : > { %v236_v23 = vpack.c.bf16 %v235_v22, %v235_v22 }
  0xa6   : > { %621 = vmatmul.mubr.msk.bf16.vlgmr.msra.gmra.mrb[0].mxu0 %vm244_vm4, %v236_v23 }
  0xa7   : > { %625 = vmatpush3.bf16.msra.mxu0 %v293_v11  ;;  %626 = vmatprep.mubr.msk.bf16.mxu0 %vm803_vm1, %v801_v3  ;;  %vm462_vm1 = vcmp.lt.s32.totalorder %v461_v0, 8 }
  0xad   : > { %639 = vmatmul.mubr.msk.bf16.vlgmr.msra.gmra.mrb[0].mxu1 %vm244_vm4, %v238_v19 }
  0xb2   : > { %627 = vmatmul.mubr.msk.bf16.vlgmr.msra.gmra.mrb[0].mxu0 %vm244_vm4, %v236_v23 }
 0x180   : > { %v412_v24 = vpop.f32.mrb[0].mxu1 }
 0x181   : > { %v431_v25 = vmul.f32 %v412_v24, %v412_v24  ;;  %v640_v26 = vpop.f32.mrb[1].mxu1 }
 0x182   : > { %v415_v27 = vpop.f32.mrb[2].mxu1 }
 0x183   : > { %v641_v28 = vpop.f32.mrb[3].mxu1  ;;  %v432_v29 = vsel %vm419_vm6, %v431_v25, 0.0 }
 0x184   : > { %433 = vadd.xlane.f32.xlu0 %v432_v29 }
 0x185   : > { %v329_v30 = vpop.f32.mrb[0].mxu0 }
 0x186   : > { %v418_v31 = vmul.f32 %v329_v30, %v329_v30  ;;  %v628_v32 = vpop.f32.mrb[1].mxu0 }
 0x187   : > { %v332_v33 = vpop.f32.mrb[2].mxu0 }
 0x188   : > { %v629_v34 = vpop.f32.mrb[3].mxu0  ;;  %v420_v35 = vsel %vm419_vm6, %v418_v31, 0.0 }
 0x189   : > { %421 = vadd.xlane.f32.xlu1 %v420_v35 }
 0x211   : > { %v434_v36 = vpop.xlane.xlu0 %433 }
 0x212   : > { %v435_v37 = vadd.f32 1e-08, %v434_v36 }
 0x214   : > { %715 = vrsqrt.f32 %v435_v37  ;;  %vm438_vm7 = vcmp.eq.f32.partialorder %v435_v37, inf  ;;  %v441_v43 = vand.u32 2147483648, %v435_v37  ;;  %vm440_vm8 = vcmp.eq.f32.partialorder %v435_v37, 0.0 }
 0x216   : > { %v422_v38 = vpop.xlane.xlu1 %421 }
 0x217   : > { %v423_v39 = vadd.f32 1e-08, %v422_v38 }
 0x219   : > { %717 = vrsqrt.f32 %v423_v39  ;;  %vm426_vm9 = vcmp.eq.f32.partialorder %v423_v39, inf  ;;  %v429_v49 = vand.u32 2147483648, %v423_v39  ;;  %vm428_vm10 = vcmp.eq.f32.partialorder %v423_v39, 0.0 }
 0x21e   : > { %v716_v40 = vpop.eup %715 }
 0x21f   : > { %v437_v41 = vmul.f32 %v716_v40, %v435_v37 }
 0x221   : > { %v439_v44 = vsel %vm438_vm7, %v435_v37, %v437_v41 }
 0x222   : > { %v442_v45 = vsel %vm440_vm8, %v441_v43, %v439_v44 }
 0x223   : > { %v718_v46 = vpop.eup %717  ;;  %v447_v47 = vsub.f32 %v443_v42, %v442_v45 }
 0x224   : > { %v425_v48 = vmul.f32 %v718_v46, %v423_v39 }
 0x225   : > { %v448_v51 = vadd.f32 0.2, %v447_v47 }
 0x226   : > { %v427_v50 = vsel %vm426_vm9, %v423_v39, %v425_v48 }
 0x227   : > { %v430_v52 = vsel %vm428_vm10, %v429_v49, %v427_v50  ;;  %v449_v55 = vmax.f32 %v448_v51, 0.0 }
 0x228   : > { %v444_v53 = vsub.f32 %v430_v52, %v443_v42 }
 0x229   : > { %vm452_vm12 = vcmp.gt.f32.partialorder %v449_v55, 0.0 }
 0x22a   : > { %v445_v54 = vadd.f32 0.2, %v444_v53 }
 0x22c   : > { %v446_v56 = vmax.f32 %v445_v54, 0.0 }
 0x22e   : > { %v450_v57 = vadd.f32 %v449_v55, %v446_v56  ;;  %vm451_vm11 = vcmp.gt.f32.partialorder %v446_v56, 0.0 }
 0x22f   : > { %vm453_vm13 = vmor %vm451_vm11, %vm452_vm12 }
 0x230   : > { %466 = vperm.xlu1 %713, %v450_v57   ;;  %v605_v58 = vsel %vm453_vm13, 1.0, %v801_v3 }
 0x231   : > { %473 = vperm.xlu0 %714, %v605_v58  }
 0x234   : > { %481 = vperm.xlu1 %713, %v443_v42  }
 0x2af   : > { %v467_v61 = vpop.permute.xlu1 %466 }
 0x2b0   : > { %v469_v62 = vsel %vm463_vm14, %v467_v61, 0.0  ;;  %v474_v63 = vpop.permute.xlu0 %473 }
 0x2b1   : > { %v476_v1 = vsel %vm470_vm15, %v474_v63, 0.0 }
 0x2b2   : > { %v477_v2 = vadd.f32 %v476_v1, %v469_v62 }
 0x2b3   : > { %v482_v3 = vpop.permute.xlu1 %481 }
 0x2b4   : > { %v484_v4 = vsel %vm478_vm0, %v482_v3, 0.0 }
 0x2b5   : > { %v485_v5 = vadd.f32 %v484_v4, %v477_v2 }
 0x2b7   : > { %v488_v6 = vsel %vm462_vm1, %v485_v5, 0.0 }
 0x2b8   : > { %v490_v7 = vrot.slane %v488_v6, 4 }
 0x2ba   : > { %v491_v8 = vadd.f32 %v490_v7, %v488_v6 }
 0x2bc   : > { %v492_v9 = vrot.slane %v491_v8, 2 }
 0x2be   : > { %v493_v10 = vadd.f32 %v492_v9, %v491_v8 }
 0x2c0   : > { %v494_v11 = vrot.slane %v493_v10, 1 }
 0x2c2   : > { %v495_v14 = vadd.f32 %v494_v11, %v493_v10 }
 0x2c4   : > { %v496_v15 = vadd.f32 %v495_v14, %v489_v12 }
 0x2c6   : > { %497 = vst [vmem:[#allocation2] sm:$0x1] %v496_v15 }
 0x2cd   : > { %v501_v13 = vld [vmem:[#allocation2] sm:$0x1] }
 0x2ce   : > { %502 = vst [vmem:[%s195_s18] sm:$0x1] %v501_v13 }
 0x2cf   : > { %732 = shalt.err (!%p729_p5)
}
 0x2d0   : > { %s733_s4 = scalar_lea.hbm %s931_s26, 16  ;;  %s737_s7 = scalar_lea.hbm %s981_s3, 32 }
 0x2d1   : > { %p734_p6 = scmp.ne.s32.totalorder %s931_s26, %s733_s4  ;;  %p738_p10 = scmp.lt.u32.totalorder %s931_s26, %s981_s3 }
 0x2d2   : > { %p739_p11 = scmp.lt.u32.totalorder %s737_s7, %s733_s4  ;;  %p741_p13 = scmp.lt.u32.totalorder %s733_s4, %s931_s26 }
 0x2d3   : > { %p735_p7 = pnand %p734_p6, %p865_p4 }
 0x2d4   : > { %p740_p12 = por %p739_p11, %p738_p10 }
 0x2d5   : > { %p736_p9 = pneg %p735_p7 }
 0x2d6   : > { %p742_p0 = por %p741_p13, %p740_p12 }
 0x2d8   : > { %p743_p1 = pnand %p742_p0, %p736_p9 }
 0x2da   : > { %746 = shalt.err (!%p743_p1)
}
 0x2db   : > { %650 = dma.vmem_to_hbm [thread:$0]  (%p865_p4), %s933_s19, 16, %s931_s26, %s504_s27  }
 0x2dc PF: > { %p656_p2 = scmp.ge.s32.totalorder %s797_s17, 2  ;;  %s528_s10 = sand.u32 1, %s777_s12  }
 0x2dd   : > { %s529_s11 = scalar_lea.sflag [#allocation4], %s528_s10 }
 0x2de   : > { %p653_p3 = pnand %p656_p2, %p872_p8 }
 0x2e0   : > { %772 = dma.done.wait (!%p653_p3), %s529_s11, 16  }
 0x2e1   : > { %774 = vsyncadd (!%p653_p3), %s529_s11, 4294967280  ;;  %s16_s17 = sadd.s32 1, %s797_s17   ;;  %s984_s12 = smov %s781_s13 }
 0x2e2   : > { %p13_p5 = scmp.ge.s32.totalorder %s16_s17, 4   ;;  %s985_s13 = smov %s785_s14 }
 0x2e3   : > { %s986_s14 = smov %s878_s25  ;;  %s987_s15 = smov %s793_s16 }
 0x2e4   : > { %s988_s16 = smov %s990_s20  ;;  %15 = sbr.rel (!%p13_p5) target bundleno = 4 (0x4), region = 78 }
 0x2eb   :  { %533 = vsyncpa [#allocation4], 1 }
 0x2ec   :  { %535 = vsyncpa [#allocation4 + $0x1], 1 }

</bundles_post_ra>
